<compile_context>
chip_gen: v7x
topology: tpu7x:2x2x1
jax: 0.10.0
libtpu: 0.0.40
codegen_flags: <defaults>
</compile_context>

<pallas_src>
import functools

import jax
import jax.numpy as jnp
from jax.experimental import pallas as pl
from jax.experimental.pallas import tpu as pltpu

LANE = 128  # every channel dimension is zero-padded to this many lanes


def _pick_tile(L):
    # Biggest row tile that divides L: per-grid-step overhead (~0.35us) and shallow DMA
    # dominate small tiles; a (2048, 128) bf16 block is only 512 KiB.
    for t in (2048, 1024, 512, 256, 128):
        if L % t == 0:
            return t
    for t in (64, 32, 16, 8):
        if L % t == 0:
            return t
    return L


# ----------------------------------------------------------------------------
# Kernel 1: conv_stem (im2col matmul) + bn1 + SiLU  ->  expand 1x1 + bn + SiLU
# ----------------------------------------------------------------------------
def _stem_expand_kernel(col_ref, wstem_ref, b1_ref, wexp_ref, bexp_ref, stem_ref, exp_ref):
    s = jnp.dot(col_ref[...], wstem_ref[...], preferred_element_type=jnp.float32) + b1_ref[...]
    s = s * jax.nn.sigmoid(s)                               # SiLU
    stem_ref[...] = s.astype(stem_ref.dtype)                # kept for the MBConv residual
    e = jnp.dot(s.astype(jnp.bfloat16), wexp_ref[...],
                preferred_element_type=jnp.float32) + bexp_ref[...]
    e = e * jax.nn.sigmoid(e)                               # SiLU
    exp_ref[...] = e.astype(exp_ref.dtype)


def stem_expand(col, w_stem, b1, w_exp, b_exp):
    n, L, K = col.shape
    C = w_stem.shape[1]
    Ce = w_exp.shape[1]
    tl = _pick_tile(L)
    return pl.pallas_call(
        _stem_expand_kernel,
        out_shape=(jax.ShapeDtypeStruct((n, L, C), jnp.bfloat16),
                   jax.ShapeDtypeStruct((n, L, Ce), jnp.bfloat16)),
        grid=(n, L // tl),
        in_specs=[
            pl.BlockSpec((None, tl, K), lambda b, j: (b, j, 0)),
            pl.BlockSpec((K, C), lambda b, j: (0, 0)),
            pl.BlockSpec((1, C), lambda b, j: (0, 0)),
            pl.BlockSpec((C, Ce), lambda b, j: (0, 0)),
            pl.BlockSpec((1, Ce), lambda b, j: (0, 0)),
        ],
        out_specs=(pl.BlockSpec((None, tl, C), lambda b, j: (b, j, 0)),
                   pl.BlockSpec((None, tl, Ce), lambda b, j: (b, j, 0))),
        compiler_params=pltpu.CompilerParams(
            dimension_semantics=("parallel", "parallel")),
    )(col, w_stem, b1, w_exp, b_exp)


# ----------------------------------------------------------------------------
# Kernel 2: depthwise 3x3 + BN + SiLU, with SE squeeze/excite fused (grid over batch)
# ----------------------------------------------------------------------------
def _dw_se_kernel(x_ref, wdw_ref, bdw_ref, wse1_ref, bse1_ref, wse2_ref, bse2_ref,
                  dw_ref, gate_ref, xpad_ref, *, inv_hw):
    h, w, c = x_ref.shape

    # Build the zero 1-px halo in VMEM (no HBM jnp.pad round trip). Border only needs
    # zeroing once: the interior is fully overwritten every grid step.
    @pl.when(pl.program_id(0) == 0)
    def _():
        xpad_ref[...] = jnp.zeros_like(xpad_ref)

    xpad_ref[1:h + 1, 1:w + 1, :] = x_ref[...].astype(jnp.float32)   # cast to f32 once

    acc = jnp.zeros((h, w, c), jnp.float32)
    for kw in range(3):
        # One kw-shifted (sublane-realigned) slab per kw instead of 9 per-tap realignments;
        # kh shifts are along the major dim and are cheap.
        slab = xpad_ref[:, kw:kw + w, :]
        for kh in range(3):
            acc = acc + slab[kh:kh + h, :, :] * wdw_ref[kh * 3 + kw, :]
    y = acc + bdw_ref[...]                   # BN scale folded into wdw; only shift here
    y = y * jax.nn.sigmoid(y)                # SiLU
    dw_ref[...] = y.astype(dw_ref.dtype)

    # squeeze-excite (GAP -> FC -> SiLU -> FC -> sigmoid) fused: (M, mid) never re-read.
    pooled = (jnp.sum(y, axis=(0, 1)) * inv_hw).reshape(1, c)
    r = jnp.dot(pooled, wse1_ref[...], preferred_element_type=jnp.float32) + bse1_ref[...]
    r = r * jax.nn.sigmoid(r)
    g = jnp.dot(r, wse2_ref[...], preferred_element_type=jnp.float32) + bse2_ref[...]
    gate_ref[...] = jax.nn.sigmoid(g).astype(gate_ref.dtype)


def dwconv_bn_silu_se(x_nhwc, w_dw, b_dw, w_se1, b_se1, w_se2, b_se2):
    n, h, w, c = x_nhwc.shape
    se = w_se1.shape[1]
    kernel = functools.partial(_dw_se_kernel, inv_hw=1.0 / (h * w))
    return pl.pallas_call(
        kernel,
        out_shape=(jax.ShapeDtypeStruct((n, h, w, c), jnp.bfloat16),
                   jax.ShapeDtypeStruct((n, 1, c), jnp.bfloat16)),
        grid=(n,),
        in_specs=[
            pl.BlockSpec((None, h, w, c), lambda b: (b, 0, 0, 0)),
            pl.BlockSpec((9, c), lambda b: (0, 0)),
            pl.BlockSpec((1, c), lambda b: (0, 0)),
            pl.BlockSpec((c, se), lambda b: (0, 0)),
            pl.BlockSpec((1, se), lambda b: (0, 0)),
            pl.BlockSpec((se, c), lambda b: (0, 0)),
            pl.BlockSpec((1, c), lambda b: (0, 0)),
        ],
        out_specs=(pl.BlockSpec((None, h, w, c), lambda b: (b, 0, 0, 0)),
                   pl.BlockSpec((None, 1, c), lambda b: (b, 0, 0))),
        scratch_shapes=[pltpu.VMEM((h + 2, w + 2, c), jnp.float32)],
        compiler_params=pltpu.CompilerParams(
            dimension_semantics=("parallel",),
            # raise v5e's 16 MiB scoped default (matches v6e/v7x defaults; safe everywhere)
            vmem_limit_bytes=32 * 1024 * 1024),
    )(x_nhwc, w_dw, b_dw, w_se1, b_se1, w_se2, b_se2)


# ----------------------------------------------------------------------------
# Kernel 3: SE gate + project 1x1 + residual + conv_head 1x1 + bn2 + SiLU
#           + global average pool + Dropout(eval) + Linear classifier
# ----------------------------------------------------------------------------
def _proj_head_pool_fc_kernel(dw_ref, gate_ref, res_ref, wproj_ref, bproj_ref,
                              whead_ref, bhead_ref, wfc_ref, bfc_ref,
                              logits_ref, acc_ref, *, inv_hw):
    j = pl.program_id(1)

    @pl.when(j == 0)
    def _():
        acc_ref[...] = jnp.zeros_like(acc_ref)

    x = dw_ref[...] * gate_ref[...]                               # SE channel gate (bf16)
    proj = jnp.dot(x, wproj_ref[...], preferred_element_type=jnp.float32) + bproj_ref[...]
    proj = proj + res_ref[...].astype(jnp.float32)                # MBConv residual add
    hd = jnp.dot(proj.astype(jnp.bfloat16), whead_ref[...],
                 preferred_element_type=jnp.float32) + bhead_ref[...]
    hd = hd * jax.nn.sigmoid(hd)                                  # SiLU
    acc_ref[...] += jnp.sum(hd, axis=0, keepdims=True)            # partial spatial sum

    @pl.when(j == pl.num_programs(1) - 1)
    def _():
        pooled = acc_ref[...] * inv_hw                            # global average pool (f32)
        # Dropout is eval-mode identity; classifier Linear fused here, pooled kept in f32.
        logits = jnp.dot(pooled, wfc_ref[...],
                         preferred_element_type=jnp.float32) + bfc_ref[...]
        logits_ref[...] = logits.astype(logits_ref.dtype)


def proj_head_pool_fc(dw_nlc, gate, stem_nlc, w_proj, b_proj, w_head, b_head, w_fc, b_fc):
    n, L, C = dw_nlc.shape
    Nh = w_head.shape[1]
    Nc = w_fc.shape[1]
    tl = _pick_tile(L)
    kernel = functools.partial(_proj_head_pool_fc_kernel, inv_hw=1.0 / L)
    return pl.pallas_call(
        kernel,
        out_shape=jax.ShapeDtypeStruct((n, 1, Nc), jnp.float32),
        grid=(n, L // tl),
        in_specs=[
            pl.BlockSpec((None, tl, C), lambda b, j: (b, j, 0)),   # dw activations
            pl.BlockSpec((None, 1, C), lambda b, j: (b, 0, 0)),    # SE gate
            pl.BlockSpec((None, tl, C), lambda b, j: (b, j, 0)),   # residual (stem)
            pl.BlockSpec((C, C), lambda b, j: (0, 0)),             # w_proj (scale folded)
            pl.BlockSpec((1, C), lambda b, j: (0, 0)),             # b_proj
            pl.BlockSpec((C, Nh), lambda b, j: (0, 0)),            # w_head (scale folded)
            pl.BlockSpec((1, Nh), lambda b, j: (0, 0)),            # b_head
            pl.BlockSpec((Nh, Nc), lambda b, j: (0, 0)),           # w_fc (f32)
            pl.BlockSpec((1, Nc), lambda b, j: (0, 0)),            # b_fc (f32)
        ],
        out_specs=pl.BlockSpec((None, 1, Nc), lambda b, j: (b, 0, 0)),
        scratch_shapes=[pltpu.VMEM((1, Nh), jnp.float32)],
        compiler_params=pltpu.CompilerParams(
            dimension_semantics=("parallel", "arbitrary")),
    )(dw_nlc, gate, stem_nlc, w_proj, b_proj, w_head, b_head, w_fc, b_fc)


# ----------------------------------------------------------------------------
# JAX glue: im2col for the 3x3 stride-2 "SAME" (TF-style) stem conv, kept in bf16
# ----------------------------------------------------------------------------
def im2col_3x3_s2_same(x_nhwc):
    n, h, w, c = x_nhwc.shape
    k, s = 3, 2
    oh, ow = -(-h // s), -(-w // s)
    pad_h = max((oh - 1) * s + k - h, 0)
    pad_w = max((ow - 1) * s + k - w, 0)
    x = jnp.pad(
        x_nhwc,
        ((0, 0), (pad_h // 2, pad_h - pad_h // 2), (pad_w // 2, pad_w - pad_w // 2), (0, 0)),
    )
    patches = [x[:, kh:kh + s * oh:s, kw:kw + s * ow:s, :]
               for kh in range(k) for kw in range(k)]
    col = jnp.concatenate(patches, axis=-1)         # (n, oh, ow, 9*c), order (kh, kw, cin)
    return col.reshape(n, oh * ow, k * k * c), (n, oh, ow)


def fold_bn(gamma, beta, mean, var, eps=1e-3):
    scale = gamma / jnp.sqrt(var + eps)
    shift = beta - mean * scale
    return scale, shift


# ----------------------------------------------------------------------------
# Parameter construction (deterministic, synthetic, lane-padded to 128, BN scale folded)
# ----------------------------------------------------------------------------
def _pad2(a, rows, cols):
    return jnp.pad(a, ((0, rows - a.shape[0]), (0, cols - a.shape[1])))


def _padrow(a, cols):
    a = a.reshape(1, -1)
    return jnp.pad(a, ((0, 0), (0, cols - a.shape[1])))


def make_params(key, in_ch=3, stem_ch=16, exp_ratio=4, se_ch=4, head_ch=64, num_classes=5):
    mid_ch = stem_ch * exp_ratio
    keys = jax.random.split(key, 16)
    nrm = lambda k, shp, sd=0.05: sd * jax.random.normal(k, shp, jnp.float32)

    def bn(k, c):
        k1, k2, k3, k4 = jax.random.split(k, 4)
        gamma = 1.0 + 0.1 * jax.random.normal(k1, (c,), jnp.float32)
        beta = 0.1 * jax.random.normal(k2, (c,), jnp.float32)
        mean = 0.1 * jax.random.normal(k3, (c,), jnp.float32)
        var = 0.5 + jnp.abs(jax.random.normal(k4, (c,), jnp.float32))
        return fold_bn(gamma, beta, mean, var)

    p = {}
    # conv_stem + bn1 : scale folded into weight columns, padded lanes stay exactly zero.
    w = nrm(keys[0], (9 * in_ch, stem_ch)); s, b = bn(keys[1], stem_ch)
    p["w_stem"] = _pad2(w * s, 9 * in_ch, LANE).astype(jnp.bfloat16)
    p["b1"] = _padrow(b, LANE)
    # expand 1x1 + bn
    w = nrm(keys[2], (stem_ch, mid_ch)); s, b = bn(keys[3], mid_ch)
    p["w_exp"] = _pad2(w * s, LANE, LANE).astype(jnp.bfloat16)
    p["b_exp"] = _padrow(b, LANE)
    # depthwise 3x3 + bn (f32, VPU path)
    w = nrm(keys[4], (3, 3, mid_ch)).reshape(9, mid_ch); s, b = bn(keys[5], mid_ch)
    p["w_dw"] = _pad2(w * s, 9, LANE)
    p["b_dw"] = _padrow(b, LANE)
    # squeeze-excite (tiny FCs, f32)
    p["w_se1"] = _pad2(nrm(keys[6], (mid_ch, se_ch)), LANE, LANE)
    p["b_se1"] = _padrow(nrm(keys[7], (se_ch,)), LANE)
    p["w_se2"] = _pad2(nrm(keys[8], (se_ch, mid_ch)), LANE, LANE)
    p["b_se2"] = _padrow(nrm(keys[9], (mid_ch,)), LANE)
    # project 1x1 + bn
    w = nrm(keys[10], (mid_ch, stem_ch)); s, b = bn(keys[11], stem_ch)
    p["w_proj"] = _pad2(w * s, LANE, LANE).astype(jnp.bfloat16)
    p["b_proj"] = _padrow(b, LANE)
    # conv_head 1x1 + bn2
    w = nrm(keys[12], (stem_ch, head_ch)); s, b = bn(keys[13], head_ch)
    p["w_head"] = _pad2(w * s, LANE, LANE).astype(jnp.bfloat16)
    p["b_head"] = _padrow(b, LANE)
    # classifier (kept f32: logits precision for free, cost negligible)
    p["w_fc"] = _pad2(nrm(keys[14], (head_ch, num_classes)), LANE, LANE)
    p["b_fc"] = _padrow(nrm(keys[15], (num_classes,)), LANE)
    return p


# ----------------------------------------------------------------------------
# Forward pass (matches ResNet.forward: x = backbone(x); return [{'y': x}])
# ----------------------------------------------------------------------------
def resnet_forward(params, x_nchw, num_classes=5, check_padding=False):
    x_nhwc = jnp.transpose(x_nchw, (0, 2, 3, 1)).astype(jnp.bfloat16)   # NCHW -> NHWC, bf16

    # TODO(synk): at real resolutions gather the strided 3x3 stem taps inside the kernel
    #             instead of materializing this im2col tensor in HBM.
    col, (n, h1, w1) = im2col_3x3_s2_same(x_nhwc)                       # (n, L, 27)
    L = h1 * w1

    # K1: conv_stem + bn1 + SiLU -> expand 1x1 + bn + SiLU (fused; exp never re-reads stem)
    stem, exp = stem_expand(col, params["w_stem"], params["b1"],
                            params["w_exp"], params["b_exp"])           # (n, L, 128) each

    # K2: depthwise 3x3 + bn + SiLU + SE (halo built in VMEM; no HBM pad pass)
    dw, gate = dwconv_bn_silu_se(exp.reshape(n, h1, w1, LANE),
                                 params["w_dw"], params["b_dw"],
                                 params["w_se1"], params["b_se1"],
                                 params["w_se2"], params["b_se2"])
    # dw: (n, h1, w1, 128) bf16 ; gate: (n, 1, 128) bf16

    # K3: gate + project + residual + conv_head + bn2 + SiLU + GAP + Dropout(eval) + Linear
    logits_pad = proj_head_pool_fc(dw.reshape(n, L, LANE), gate, stem,
                                   params["w_proj"], params["b_proj"],
                                   params["w_head"], params["b_head"],
                                   params["w_fc"], params["b_fc"])      # (n, 1, 128) f32
    logits_full = logits_pad.reshape(n, -1)
    if check_padding:
        # zero-padded weight columns / shifts must keep padded logit lanes exactly zero
        assert bool(jnp.all(logits_full[:, num_classes:] == 0.0)), "padded lanes leaked"
    return [{"y": logits_full[:, :num_classes]}]


if __name__ == "__main__":
    key = jax.random.PRNGKey(0)
    k_param, k_in = jax.random.split(key)
    params = make_params(k_param)

    x = jax.random.normal(k_in, (2, 3, 32, 32), jnp.float32)  # NCHW, like the PyTorch module

    out = resnet_forward(params, x, check_padding=True)
    y = out[0]["y"]
    jax.block_until_ready(y)
    assert y.shape == (2, 5) and bool(jnp.all(jnp.isfinite(y)))
    print("KERNEL_OK")
</pallas_src>

<mosaic_0001>
module attributes {stable_mosaic.version = 11 : i64} {
  func.func @_stem_expand_kernel(%arg0: i32, %arg1: i32, %arg2: memref<1x256x27xbf16, #tpu.memory_space<vmem>>, %arg3: memref<27x128xbf16, #tpu.memory_space<vmem>>, %arg4: memref<1x128xf32, #tpu.memory_space<vmem>>, %arg5: memref<128x128xbf16, #tpu.memory_space<vmem>>, %arg6: memref<1x128xf32, #tpu.memory_space<vmem>>, %arg7: memref<1x256x128xbf16, #tpu.memory_space<vmem>>, %arg8: memref<1x256x128xbf16, #tpu.memory_space<vmem>>) attributes {dimension_semantics = [#tpu.dimension_semantics<parallel>, #tpu.dimension_semantics<parallel>], iteration_bounds = array<i64: 2, 1>, scalar_prefetch = 0 : i64, scratch_operands = 0 : i64, tpu.core_type = #tpu.core_type<tc>, window_params = [{transform_indices = @transform_0, window_bounds = array<i64: 1, 256, 27>}, {pipeline_mode = #tpu.pipeline_mode<synchronous>, transform_indices = @transform_1, window_bounds = array<i64: 27, 128>}, {pipeline_mode = #tpu.pipeline_mode<synchronous>, transform_indices = @transform_2, window_bounds = array<i64: 1, 128>}, {pipeline_mode = #tpu.pipeline_mode<synchronous>, transform_indices = @transform_3, window_bounds = array<i64: 128, 128>}, {pipeline_mode = #tpu.pipeline_mode<synchronous>, transform_indices = @transform_4, window_bounds = array<i64: 1, 128>}, {transform_indices = @transform_5, window_bounds = array<i64: 1, 256, 128>}, {transform_indices = @transform_6, window_bounds = array<i64: 1, 256, 128>}]} {
    %c0 = arith.constant 0 : index
    %c0_0 = arith.constant 0 : index
    %c0_1 = arith.constant 0 : index
    %0 = vector.load %arg2[%c0, %c0_0, %c0_1] : memref<1x256x27xbf16, #tpu.memory_space<vmem>>, vector<1x256x27xbf16>
    %1 = vector.shape_cast %0 : vector<1x256x27xbf16> to vector<256x27xbf16>
    %c0_2 = arith.constant 0 : index
    %c0_3 = arith.constant 0 : index
    %2 = vector.load %arg3[%c0_2, %c0_3] : memref<27x128xbf16, #tpu.memory_space<vmem>>, vector<27x128xbf16>
    %cst = arith.constant dense<0.000000e+00> : vector<256x128xf32>
    %3 = tpu.matmul %1, %2, %cst {dimension_numbers = #tpu.dot_dimension_numbers<[1], [0], [0], [1], [0, 0, 1, 1], [], []>} : vector<256x27xbf16>, vector<27x128xbf16>, vector<256x128xf32> -> vector<256x128xf32>
    %c0_4 = arith.constant 0 : index
    %c0_5 = arith.constant 0 : index
    %4 = vector.load %arg4[%c0_4, %c0_5] : memref<1x128xf32, #tpu.memory_space<vmem>>, vector<1x128xf32>
    %5 = vector.broadcast %4 : vector<1x128xf32> to vector<256x128xf32>
    %6 = arith.addf %3, %5 : vector<256x128xf32>
    %7 = arith.negf %6 : vector<256x128xf32>
    %8 = math.exp %7 : vector<256x128xf32>
    %cst_6 = arith.constant 1.000000e+00 : f32
    %9 = vector.broadcast %cst_6 : f32 to vector<256x128xf32>
    %10 = arith.addf %9, %8 : vector<256x128xf32>
    %11 = arith.divf %9, %10 : vector<256x128xf32>
    %12 = arith.mulf %6, %11 : vector<256x128xf32>
    %13 = arith.truncf %12 : vector<256x128xf32> to vector<256x128xbf16>
    %c0_7 = arith.constant 0 : index
    %c0_8 = arith.constant 0 : index
    %c0_9 = arith.constant 0 : index
    %14 = vector.load %arg7[%c0_7, %c0_8, %c0_9] : memref<1x256x128xbf16, #tpu.memory_space<vmem>>, vector<1x256x128xbf16>
    %15 = vector.shape_cast %14 : vector<1x256x128xbf16> to vector<256x128xbf16>
    %16 = vector.shape_cast %13 : vector<256x128xbf16> to vector<1x256x128xbf16>
    tpu.vector_store %arg7[%c0_7, %c0_8, %c0_9], %16 {strides = array<i32>} : memref<1x256x128xbf16, #tpu.memory_space<vmem>>, vector<1x256x128xbf16>,
    %17 = arith.truncf %12 : vector<256x128xf32> to vector<256x128xbf16>
    %c0_10 = arith.constant 0 : index
    %c0_11 = arith.constant 0 : index
    %18 = vector.load %arg5[%c0_10, %c0_11] : memref<128x128xbf16, #tpu.memory_space<vmem>>, vector<128x128xbf16>
    %cst_12 = arith.constant dense<0.000000e+00> : vector<256x128xf32>
    %19 = tpu.matmul %17, %18, %cst_12 {dimension_numbers = #tpu.dot_dimension_numbers<[1], [0], [0], [1], [0, 0, 1, 1], [], []>} : vector<256x128xbf16>, vector<128x128xbf16>, vector<256x128xf32> -> vector<256x128xf32>
    %c0_13 = arith.constant 0 : index
    %c0_14 = arith.constant 0 : index
    %20 = vector.load %arg6[%c0_13, %c0_14] : memref<1x128xf32, #tpu.memory_space<vmem>>, vector<1x128xf32>
    %21 = vector.broadcast %20 : vector<1x128xf32> to vector<256x128xf32>
    %22 = arith.addf %19, %21 : vector<256x128xf32>
    %23 = arith.negf %22 : vector<256x128xf32>
    %24 = math.exp %23 : vector<256x128xf32>
    %cst_15 = arith.constant 1.000000e+00 : f32
    %25 = vector.broadcast %cst_15 : f32 to vector<256x128xf32>
    %26 = arith.addf %25, %24 : vector<256x128xf32>
    %27 = arith.divf %25, %26 : vector<256x128xf32>
    %28 = arith.mulf %22, %27 : vector<256x128xf32>
    %29 = arith.truncf %28 : vector<256x128xf32> to vector<256x128xbf16>
    %c0_16 = arith.constant 0 : index
    %c0_17 = arith.constant 0 : index
    %c0_18 = arith.constant 0 : index
    %30 = vector.load %arg8[%c0_16, %c0_17, %c0_18] : memref<1x256x128xbf16, #tpu.memory_space<vmem>>, vector<1x256x128xbf16>
    %31 = vector.shape_cast %30 : vector<1x256x128xbf16> to vector<256x128xbf16>
    %32 = vector.shape_cast %29 : vector<256x128xbf16> to vector<1x256x128xbf16>
    tpu.vector_store %arg8[%c0_16, %c0_17, %c0_18], %32 {strides = array<i32>} : memref<1x256x128xbf16, #tpu.memory_space<vmem>>, vector<1x256x128xbf16>,
    return
  }
  func.func @transform_0(%arg0: i32, %arg1: i32) -> (i32, i32, i32) {
    %c0_i32 = arith.constant 0 : i32
    %c0_i32_0 = arith.constant 0 : i32
    return %arg0, %arg1, %c0_i32 : i32, i32, i32
  }
  func.func @transform_1(%arg0: i32, %arg1: i32) -> (i32, i32) {
    %c0_i32 = arith.constant 0 : i32
    %c0_i32_0 = arith.constant 0 : i32
    %c0_i32_1 = arith.constant 0 : i32
    return %c0_i32, %c0_i32_0 : i32, i32
  }
  func.func @transform_2(%arg0: i32, %arg1: i32) -> (i32, i32) {
    %c0_i32 = arith.constant 0 : i32
    %c0_i32_0 = arith.constant 0 : i32
    %c0_i32_1 = arith.constant 0 : i32
    return %c0_i32, %c0_i32_0 : i32, i32
  }
  func.func @transform_3(%arg0: i32, %arg1: i32) -> (i32, i32) {
    %c0_i32 = arith.constant 0 : i32
    %c0_i32_0 = arith.constant 0 : i32
    %c0_i32_1 = arith.constant 0 : i32
    return %c0_i32, %c0_i32_0 : i32, i32
  }
  func.func @transform_4(%arg0: i32, %arg1: i32) -> (i32, i32) {
    %c0_i32 = arith.constant 0 : i32
    %c0_i32_0 = arith.constant 0 : i32
    %c0_i32_1 = arith.constant 0 : i32
    return %c0_i32, %c0_i32_0 : i32, i32
  }
  func.func @transform_5(%arg0: i32, %arg1: i32) -> (i32, i32, i32) {
    %c0_i32 = arith.constant 0 : i32
    %c0_i32_0 = arith.constant 0 : i32
    return %arg0, %arg1, %c0_i32 : i32, i32, i32
  }
  func.func @transform_6(%arg0: i32, %arg1: i32) -> (i32, i32, i32) {
    %c0_i32 = arith.constant 0 : i32
    %c0_i32_0 = arith.constant 0 : i32
    return %arg0, %arg1, %c0_i32 : i32, i32, i32
  }
}

</mosaic_0001>

<bundles_post_ra>
// kernel: tpu_custom_call.1
= control target key start
LH: loop header
LB: loop body
LE: loop exit
PB: predicated region body
PF: predicated region fallthrough
CT: control target
= control target key end

     0   :  { %12 = vsyncpa [#allocation3], 0  ;;  %s3480_s0 = inlined_call_operand.vmem [shape: bf16[2,256,27], index: 0, kind: input, shape index: {}]   ;;  %s3481_s1 = inlined_call_operand.vmem [shape: bf16[27,128], index: 1, kind: input, shape index: {}]   ;;  %s3482_s2 = inlined_call_operand.vmem [shape: f32[1,128], index: 2, kind: input, shape index: {}]   ;;  %s3483_s3 = inlined_call_operand.vmem [shape: bf16[128,128], index: 3, kind: input, shape index: {}]   ;;  %s3484_s4 = inlined_call_operand.vmem [shape: f32[1,128], index: 4, kind: input, shape index: {}]   ;;  %s3485_s5 = inlined_call_operand.hbm [shape: bf16[2,256,128], index: 5, kind: output, shape index: {0}]   ;;  %s3486_s6 = inlined_call_operand.hbm [shape: bf16[2,256,128], index: 6, kind: output, shape index: {1}]  }
   0x1   :  { %14 = vsyncpa [#allocation3 + $0x1], 0 }
   0x2   :  { %15 = vsyncpa [#allocation5], 0 }
   0x3   :  { %17 = vsyncpa [#allocation5 + $0x1], 0  ;;  %s2885_s21 = smov 0   ;;  %s2887_s22 = smov 0  }
   0x4   :  { %s2889_s23 = smov 0   ;;  %s2891_s24 = smov 0  }
   0x5   :  { %s2893_s25 = smov 0   ;;  %s2895_s26 = smov 0  }
   0x6 LB: > { %s1800_s27 = sadd.s32 4294967295, %s2843_s26   ;;  %s1801_s28 = sadd.s32 4294967294, %s2843_s26   ;;  %s2843_s26 = sphi %s2895_s26, %s23_s26   ;;  %s2839_s25 = sphi %s2893_s25, %s3493_s25   ;;  %s2835_s24 = sphi %s2891_s24, %s3492_s24   ;;  %s2831_s23 = sphi %s2889_s23, %s3491_s23   ;;  %s2827_s22 = sphi %s2887_s22, %s3490_s22   ;;  %s2823_s21 = sphi %s2885_s21, %s3489_s21  }
   0x7   : > { %s35_s29 = sadd.s32 1, %s2839_s25  ;;  %s156_s30 = sadd.s32 1, %s2831_s23 }
   0x8   : > { %p37_p0 = scmp.ge.s32.totalorder %s35_s29, 2  ;;  %p166_p1 = scmp.ne.s32.totalorder %s2831_s23, %s2827_s22 }
   0x9   : > { %p167_p2 = scmp.eq.s32.totalorder %s1800_s27, 1  ;;  %p172_p3 = scmp.ne.s32.totalorder %s2827_s22, %s2823_s21 }
   0xa   : > { %s3495_s29 = smov (%p37_p0, %s35_s29), 0  ;;  %p173_p5 = scmp.eq.s32.totalorder %s1801_s28, 1 }
   0xb   : > { %p2925_p4 = por %p167_p2, %p166_p1  ;;  %s151_s8 = ssub.s32 %s2839_s25, %s3495_s29 }
   0xc   : > { %p1804_p6 = scmp.ge.s32.totalorder %s2843_s26, 1  ;;  %p154_p7 = scmp.eq.s32.totalorder %s151_s8, 0 }
   0xd   : > { %p2932_p8 = por %p173_p5, %p172_p3  ;;  %p244_p9 = scmp.lt.s32.totalorder %s2843_s26, 3 }
   0xe   : > { %s2938_s10 = scalar_select %p154_p7, %s2831_s23, %s156_s30  }
   0xf   : > { %p245_p10 = pnand %p1804_p6, %p244_p9 }
  0x10   : > { %v2451_v0 = vld [vmem:[%s3481_s1] sm:$0xff] (!%p245_p10)   ;;  %vm479_vm0 = vcmask (!%p245_p10), 1044480   ;;  %v2452_v1 = vld [vmem:[%s3481_s1 + $0x8] sm:$0x3f] (!%p245_p10)   ;;  %vm480_vm1 = vcmask (!%p245_p10), 1045504   ;;  %p284_p11 = scmp.lt.s32.totalorder (!%p245_p10), %s2835_s24, 1 }
  0x11   : > { %248 = sbr.rel (%p245_p10) target bundleno = 599 (0x257), region = 40  ;;  %2288 = vmatprep.subr.bf16.mxu0 (!%p245_p10), %v2451_v0  ;;  %v2845_v2 = vmov (!%p245_p10), 65535   ;;  %vm430_vm2 = vcmask (!%p245_p10), 220160   ;;  %v2469_v22 = vld [vmem:[%s3483_s3] sm:$0xff] (!%p245_p10)   ;;  %v2470_v23 = vld [vmem:[%s3483_s3 + $0x8] sm:$0xff] (!%p245_p10)   ;;  %v2471_v24 = vld [vmem:[%s3483_s3 + $0x10] sm:$0xff] (!%p245_p10)  }
  0x12   : > { %2289 = vmatpush3.bf16.msra.mxu0 (!%p245_p10), %v2451_v0  ;;  %v481_v3 = vsel (!%p245_p10), %vm479_vm0, 4294967295, %v2845_v2  ;;  %2372 = vmatprep.subr.bf16.mxu1 (!%p245_p10), %v2469_v22  ;;  %v2472_v25 = vld [vmem:[%s3483_s3 + $0x18] sm:$0xff] (!%p245_p10)   ;;  %v2473_v26 = vld [vmem:[%s3483_s3 + $0x20] sm:$0xff] (!%p245_p10)   ;;  %v2474_v27 = vld [vmem:[%s3483_s3 + $0x28] sm:$0xff] (!%p245_p10)   ;;  %s3066_s8 = sand.u32 (!%p245_p10), 1, %s2827_s22   ;;  %s2054_s13 = sshll.u32 (!%p245_p10), %s2835_s24, 11 }
  0x13   : > { %v482_v4 = vsel (!%p245_p10), %vm480_vm1, %v481_v3, 0  ;;  %2380 = vmatpush3.bf16.msra.mxu1 (!%p245_p10), %v2469_v22  ;;  %v2475_v28 = vld [vmem:[%s3483_s3 + $0x30] sm:$0xff] (!%p245_p10)   ;;  %v2476_v29 = vld [vmem:[%s3483_s3 + $0x38] sm:$0xff] (!%p245_p10)   ;;  %v3012_v30 = vld [vmem:[%s3482_s2] ss:$0 sm:$0xff] (!%p245_p10)  ;;  %s1805_s11 = sshll.u32 (!%p245_p10), %s3066_s8, 7  ;;  %s3205_s17 = scalar_lea.hbm (!%p245_p10), %s3485_s5, %s2054_s13 }
  0x14   : > { %v484_v5 = vand.u32 (!%p245_p10), %v2452_v1, %v482_v4  ;;  %2373 = vmatprep.subr.bf16.mxu1 (!%p245_p10), %v2470_v23  ;;  %s3094_s12 = scalar_lea.vmem (!%p245_p10), [#allocation2], %s1805_s11  ;;  %s1648_s18 = scalar_lea.sflag (!%p245_p10), [#allocation3], %s3066_s8 }
  0x15   : > { %s1668_s14 = sshll.u32 (!%p245_p10), %s3094_s12, 4  ;;  %s2846_s20 = smov (!%p245_p10), [#allocation2]   ;;  %s3207_s14 = int_to_ptr.vmem [resolvable:$true] %s1668_s14 }
  0x16   : > { %2290 = vmatprep.subr.bf16.mxu0 (!%p245_p10), %v484_v5  ;;  %s2737_s27 = sshll.u32 (!%p245_p10), %s2846_s20, 4  ;;  %s2738_s27 = int_to_ptr.vmem [resolvable:$false] %s2737_s27 }
  0x17   : > { %2291 = vmatpush3.bf16.msra.mxu0 (!%p245_p10), %v484_v5  ;;  %2381 = vmatpush3.bf16.msra.mxu1 (!%p245_p10), %v2470_v23  ;;  %s2739_s28 = scalar_lea.vmem (!%p245_p10), %s2738_s27, 4096  ;;  %p2740_p1 = scmp.lt.s32.totalorder (!%p245_p10), %s3207_s14, %s2738_s27 }
  0x18   : > { %s285_s15 = scalar_select %p284_p11, %s2835_s24, 1  ;;  %2324 = vmatprep.subr.bf16.mxu0 %v2469_v22  ;;  %2374 = vmatprep.subr.bf16.mxu1 %v2471_v24 }
  0x1a   : > { %s1989_s16 = sshll.u32 %s285_s15, 7 }
  0x1b   : > { %s2951_s19 = scalar_lea.vmem %s3480_s0, %s1989_s16  ;;  %2382 = vmatpush3.bf16.msra.mxu1 %v2471_v24 }
  0x1c   : > { %v2453_v6 = vld [vmem:[%s2951_s19] sm:$0xff]   ;;  %v2454_v7 = vld [vmem:[%s2951_s19 + $0x8] sm:$0xff]   ;;  %v2455_v8 = vld [vmem:[%s2951_s19 + $0x10] sm:$0xff]   ;;  %2375 = vmatprep.subr.bf16.mxu1 %v2472_v25 }
  0x1d   : > { %2292 = vmatprep.mubr.msk.bf16.mxu0 %vm430_vm2, %v2453_v6  ;;  %v2456_v9 = vld [vmem:[%s2951_s19 + $0x18] sm:$0xff]   ;;  %v2457_v10 = vld [vmem:[%s2951_s19 + $0x20] sm:$0xff]   ;;  %v2458_v11 = vld [vmem:[%s2951_s19 + $0x28] sm:$0xff]  }
  0x1e   : > { %2293 = vmatmul.mubr.msk.bf16.vlgmr.msra.gmra.mrb[0].mxu0 %vm430_vm2, %v2454_v7  ;;  %v2459_v12 = vld [vmem:[%s2951_s19 + $0x30] sm:$0xff]   ;;  %v2460_v13 = vld [vmem:[%s2951_s19 + $0x38] sm:$0xff]   ;;  %v2461_v14 = vld [vmem:[%s2951_s19 + $0x40] sm:$0xff]  }
  0x1f   : > { %2296 = vmatprep.mubr.msk.bf16.mxu0 %vm430_vm2, %v2455_v8  ;;  %v2462_v15 = vld [vmem:[%s2951_s19 + $0x48] sm:$0xff]   ;;  %v2463_v16 = vld [vmem:[%s2951_s19 + $0x50] sm:$0xff]   ;;  %v2464_v17 = vld [vmem:[%s2951_s19 + $0x58] sm:$0xff]   ;;  %2325 = vmatpush3.bf16.msra.mxu0 %v2469_v22 }
  0x20   : > { %v2465_v18 = vld [vmem:[%s2951_s19 + $0x60] sm:$0xff]   ;;  %v2466_v19 = vld [vmem:[%s2951_s19 + $0x68] sm:$0xff]   ;;  %v2467_v20 = vld [vmem:[%s2951_s19 + $0x70] sm:$0xff]   ;;  %2326 = vmatprep.subr.bf16.mxu0 %v2470_v23  ;;  %2383 = vmatpush3.bf16.msra.mxu1 %v2472_v25 }
  0x21   : > { %v2468_v21 = vld [vmem:[%s2951_s19 + $0x78] sm:$0xff]   ;;  %2376 = vmatprep.subr.bf16.mxu1 %v2473_v26  ;;  %s2733_s19 = scalar_lea.vmem %s3207_s14, 2048 }
  0x22   : > { %p2734_p12 = scmp.ne.s32.totalorder %s3207_s14, %s2733_s19  ;;  %p2741_p2 = scmp.lt.s32.totalorder %s2739_s28, %s2733_s19 }
  0x23   : > { %2327 = vmatpush3.bf16.msra.mxu0 %v2470_v23 }
  0x24   : > { %2328 = vmatprep.subr.bf16.mxu0 %v2471_v24  ;;  %2384 = vmatpush3.bf16.msra.mxu1 %v2473_v26  ;;  %p2735_p13 = pnand %p2734_p12, %p2925_p4  ;;  %p2742_p3 = por %p2741_p2, %p2740_p1 }
  0x25   : > { %2377 = vmatprep.subr.bf16.mxu1 %v2474_v27 }
  0x26   : > { %2297 = vmatmul.mubr.msk.bf16.gmra.mrb[4].mxu0 %vm430_vm2, %v2456_v9  ;;  %p2736_p0 = pneg %p2735_p13 }
  0x27   : > { %2300 = vmatprep.mubr.msk.bf16.mxu0 %vm430_vm2, %v2457_v10  ;;  %2329 = vmatpush3.bf16.msra.mxu0 %v2471_v24 }
  0x28   : > { %2330 = vmatprep.subr.bf16.mxu0 %v2472_v25  ;;  %2385 = vmatpush3.bf16.msra.mxu1 %v2474_v27  ;;  %p2743_p5 = pnand %p2742_p3, %p2736_p0 }
  0x29   : > { %2378 = vmatprep.subr.bf16.mxu1 %v2475_v28 }
  0x2b   : > { %2331 = vmatpush3.bf16.msra.mxu0 %v2472_v25 }
  0x2c   : > { %2332 = vmatprep.subr.bf16.mxu0 %v2473_v26  ;;  %2386 = vmatpush3.bf16.msra.mxu1 %v2475_v28 }
  0x2d   : > { %2379 = vmatprep.subr.bf16.mxu1 %v2476_v29 }
  0x2e   : > { %2301 = vmatmul.mubr.msk.bf16.gmra.mrb[8].mxu0 %vm430_vm2, %v2458_v11 }
  0x2f   : > { %2304 = vmatprep.mubr.msk.bf16.mxu0 %vm430_vm2, %v2459_v12  ;;  %2333 = vmatpush3.bf16.msra.mxu0 %v2473_v26 }
  0x30   : > { %2334 = vmatprep.subr.bf16.mxu0 %v2474_v27  ;;  %2387 = vmatpush3.bf16.msra.mxu1 %v2476_v29 }
  0x33   : > { %2335 = vmatpush3.bf16.msra.mxu0 %v2474_v27 }
  0x34   : > { %2336 = vmatprep.subr.bf16.mxu0 %v2475_v28 }
  0x36   : > { %2305 = vmatmul.mubr.msk.bf16.gmra.mrb[12].mxu0 %vm430_vm2, %v2460_v13 }
  0x37   : > { %2308 = vmatprep.mubr.msk.bf16.mxu0 %vm430_vm2, %v2461_v14  ;;  %2337 = vmatpush3.bf16.msra.mxu0 %v2475_v28 }
  0x38   : > { %2338 = vmatprep.subr.bf16.mxu0 %v2476_v29 }
  0x3b   : > { %2339 = vmatpush3.bf16.msra.mxu0 %v2476_v29 }
  0x3e   : > { %2309 = vmatmul.mubr.msk.bf16.gmra.mrb[16].mxu0 %vm430_vm2, %v2462_v15 }
  0x3f   : > { %2312 = vmatprep.mubr.msk.bf16.mxu0 %vm430_vm2, %v2463_v16 }
  0x46   : > { %2313 = vmatmul.mubr.msk.bf16.gmra.mrb[20].mxu0 %vm430_vm2, %v2464_v17 }
  0x47   : > { %2316 = vmatprep.mubr.msk.bf16.mxu0 %vm430_vm2, %v2465_v18 }
  0x4e   : > { %2317 = vmatmul.mubr.msk.bf16.gmra.mrb[24].mxu0 %vm430_vm2, %v2466_v19 }
  0x4f   : > { %2320 = vmatprep.mubr.msk.bf16.mxu0 %vm430_vm2, %v2467_v20 }
  0x56   : > { %2321 = vmatmul.mubr.msk.bf16.gmra.mrb[28].mxu0 %vm430_vm2, %v2468_v21 }
  0xf1   : > { %v2294_v31 = vpop.f32.mrb[0].mxu0 }
  0xf2   : > { %v3015_v32 = vadd.f32 %v2294_v31, %v3012_v30  ;;  %v520_v33 = vpop.f32.mrb[1].mxu0 }
  0xf3   : > { %v3018_v34 = vadd.f32 %v3012_v30, %v520_v33  ;;  %v2295_v35 = vpop.f32.mrb[2].mxu0 }
  0xf4   : > { %v1846_v36 = vmul.f32 -1.442695, %v3015_v32  ;;  %v3022_v37 = vadd.f32 %v2295_v35, %v3012_v30  ;;  %v523_v38 = vpop.f32.mrb[3].mxu0 }
  0xf5   : > { %v1844_v39 = vmul.f32 -1.442695, %v3018_v34  ;;  %v3026_v40 = vadd.f32 %v3012_v30, %v523_v38 }
  0xf6   : > { %2477 = vpow2.f32 %v1846_v36  ;;  %v1847_v41 = vmul.f32 -1.442695, %v3022_v37 }
  0xf7   : > { %2479 = vpow2.f32 %v1844_v39  ;;  %v1845_v42 = vmul.f32 -1.442695, %v3026_v40 }
  0xf8   : > { %2481 = vpow2.f32 %v1847_v41 }
  0xf9   : > { %2483 = vpow2.f32 %v1845_v42  ;;  %v2298_v43 = vpop.f32.mrb[4].mxu0 }
  0xfa   : > { %v3031_v44 = vadd.f32 %v2298_v43, %v3012_v30  ;;  %v536_v45 = vpop.f32.mrb[5].mxu0 }
  0xfb   : > { %v3034_v46 = vadd.f32 %v3012_v30, %v536_v45  ;;  %v2299_v47 = vpop.f32.mrb[6].mxu0 }
  0xfc   : > { %v1850_v48 = vmul.f32 -1.442695, %v3031_v44  ;;  %v3038_v49 = vadd.f32 %v2299_v47, %v3012_v30  ;;  %v539_v50 = vpop.f32.mrb[7].mxu0 }
  0xfd   : > { %v1848_v51 = vmul.f32 -1.442695, %v3034_v46  ;;  %v3042_v52 = vadd.f32 %v3012_v30, %v539_v50 }
  0xfe   : > { %2485 = vpow2.f32 %v1850_v48  ;;  %v1851_v53 = vmul.f32 -1.442695, %v3038_v49 }
  0xff   : > { %2487 = vpow2.f32 %v1848_v51  ;;  %v1849_v54 = vmul.f32 -1.442695, %v3042_v52 }
 0x100   : > { %v2478_v55 = vpop.eup %2477  ;;  %2489 = vpow2.f32 %v1851_v53 }
 0x101   : > { %v2480_v56 = vpop.eup %2479  ;;  %v745_v57 = vadd.f32 1.0, %v2478_v55  ;;  %2491 = vpow2.f32 %v1849_v54  ;;  %v2302_v58 = vpop.f32.mrb[8].mxu0 }
 0x102   : > { %v2482_v59 = vpop.eup %2481  ;;  %v743_v60 = vadd.f32 1.0, %v2480_v56  ;;  %v3047_v61 = vadd.f32 %v2302_v58, %v3012_v30  ;;  %v552_v62 = vpop.f32.mrb[9].mxu0 }
 0x103   : > { %v2484_v63 = vpop.eup %2483  ;;  %2493 = vrcp.f32 %v745_v57  ;;  %v746_v0 = vadd.f32 1.0, %v2482_v59  ;;  %v3050_v1 = vadd.f32 %v3012_v30, %v552_v62  ;;  %v2303_v2 = vpop.f32.mrb[10].mxu0 }
 0x104   : > { %2495 = vrcp.f32 %v743_v60  ;;  %v744_v3 = vadd.f32 1.0, %v2484_v63  ;;  %v1854_v4 = vmul.f32 -1.442695, %v3047_v61  ;;  %v3054_v5 = vadd.f32 %v2303_v2, %v3012_v30  ;;  %v555_v6 = vpop.f32.mrb[11].mxu0 }
 0x105   : > { %2497 = vrcp.f32 %v746_v0  ;;  %v1852_v7 = vmul.f32 -1.442695, %v3050_v1  ;;  %v3058_v8 = vadd.f32 %v3012_v30, %v555_v6 }
 0x106   : > { %2499 = vrcp.f32 %v744_v3  ;;  %v1855_v9 = vmul.f32 -1.442695, %v3054_v5 }
 0x107   : > { %2501 = vpow2.f32 %v1854_v4  ;;  %v1853_v10 = vmul.f32 -1.442695, %v3058_v8 }
 0x108   : > { %v2486_v11 = vpop.eup %2485  ;;  %2503 = vpow2.f32 %v1852_v7 }
 0x109   : > { %v2488_v12 = vpop.eup %2487  ;;  %v749_v13 = vadd.f32 1.0, %v2486_v11  ;;  %2505 = vpow2.f32 %v1855_v9  ;;  %v2306_v14 = vpop.f32.mrb[12].mxu0 }
 0x10a   : > { %v2490_v15 = vpop.eup %2489  ;;  %v747_v16 = vadd.f32 1.0, %v2488_v12  ;;  %2507 = vpow2.f32 %v1853_v10  ;;  %v3063_v17 = vadd.f32 %v2306_v14, %v3012_v30  ;;  %v568_v18 = vpop.f32.mrb[13].mxu0 }
 0x10b   : > { %v2492_v19 = vpop.eup %2491  ;;  %2509 = vrcp.f32 %v749_v13  ;;  %v750_v20 = vadd.f32 1.0, %v2490_v15  ;;  %v3069_v21 = vadd.f32 %v3012_v30, %v568_v18  ;;  %v2307_v22 = vpop.f32.mrb[14].mxu0 }
 0x10c   : > { %2511 = vrcp.f32 %v747_v16  ;;  %v748_v23 = vadd.f32 1.0, %v2492_v19  ;;  %v1858_v24 = vmul.f32 -1.442695, %v3063_v17  ;;  %v3073_v25 = vadd.f32 %v2307_v22, %v3012_v30  ;;  %v571_v26 = vpop.f32.mrb[15].mxu0 }
 0x10d   : > { %v2494_v27 = vpop.eup %2493  ;;  %2513 = vrcp.f32 %v750_v20  ;;  %v1856_v28 = vmul.f32 -1.442695, %v3069_v21  ;;  %v3077_v29 = vadd.f32 %v3012_v30, %v571_v26 }
 0x10e   : > { %v2496_v31 = vpop.eup %2495  ;;  %2515 = vrcp.f32 %v748_v23  ;;  %v1859_v33 = vmul.f32 -1.442695, %v3073_v25  ;;  %v841_v39 = vmul.f32 %v2494_v27, %v3015_v32 }
 0x10f   : > { %v2498_v35 = vpop.eup %2497  ;;  %2517 = vpow2.f32 %v1858_v24  ;;  %v1857_v36 = vmul.f32 -1.442695, %v3077_v29  ;;  %v839_v43 = vmul.f32 %v2496_v31, %v3018_v34 }
 0x110   : > { %v2500_v38 = vpop.eup %2499  ;;  %v842_v41 = vmul.f32 %v2498_v35, %v3022_v37  ;;  %2519 = vpow2.f32 %v1856_v28 }
 0x111   : > { %v2502_v42 = vpop.eup %2501  ;;  %v840_v45 = vmul.f32 %v2500_v38, %v3026_v40  ;;  %2521 = vpow2.f32 %v1859_v33  ;;  %v2310_v47 = vpop.f32.mrb[16].mxu0 }
 0x112   : > { %v2504_v48 = vpop.eup %2503  ;;  %v872_v50 = vpack.c.bf16 %v842_v41, %v841_v39  ;;  %v753_v51 = vadd.f32 1.0, %v2502_v42  ;;  %2523 = vpow2.f32 %v1857_v36  ;;  %v3087_v53 = vadd.f32 %v2310_v47, %v3012_v30  ;;  %v584_v54 = vpop.f32.mrb[17].mxu0 }
 0x113   : > { %v2506_v32 = vpop.eup %2505  ;;  %v751_v55 = vadd.f32 1.0, %v2504_v48  ;;  %v3090_v37 = vadd.f32 %v3012_v30, %v584_v54  ;;  %v2311_v56 = vpop.f32.mrb[18].mxu0  ;;  %v871_v34 = vpack.c.bf16 %v840_v45, %v839_v43 }
 0x114   : > { %v2508_v57 = vpop.eup %2507  ;;  %2216 = vst [vmem:[%s3094_s12 + $0x8] sm:$0xff] %v872_v50   ;;  %2525 = vrcp.f32 %v753_v51  ;;  %v754_v40 = vadd.f32 1.0, %v2506_v32  ;;  %v1862_v58 = vmul.f32 -1.442695, %v3087_v53  ;;  %v3099_v59 = vadd.f32 %v2311_v56, %v3012_v30  ;;  %v587_v60 = vpop.f32.mrb[19].mxu0 }
 0x115   : > { %v2510_v62 = vpop.eup %2509  ;;  %2527 = vrcp.f32 %v751_v55  ;;  %v752_v63 = vadd.f32 1.0, %v2508_v57  ;;  %v1860_v0 = vmul.f32 -1.442695, %v3090_v37  ;;  %v3103_v2 = vadd.f32 %v3012_v30, %v587_v60  ;;  %2060 = vst [vmem:[%s3094_s12] sm:$0xff] %v871_v34   ;;  %2340 = vmatprep.mubr.bf16.mxu0 %v871_v34 }
 0x116   : > { %v2512_v3 = vpop.eup %2511  ;;  %2529 = vrcp.f32 %v754_v40  ;;  %v1863_v4 = vmul.f32 -1.442695, %v3099_v59  ;;  %2341 = vmatmul.mubr.bf16.vlgmr.msra.gmra.mrb[32].mxu0 %v872_v50  ;;  %v845_v10 = vmul.f32 %v2510_v62, %v3031_v44 }
 0x117   : > { %v2514_v6 = vpop.eup %2513  ;;  %2531 = vrcp.f32 %v752_v63  ;;  %v1861_v7 = vmul.f32 -1.442695, %v3103_v2  ;;  %v843_v13 = vmul.f32 %v2512_v3, %v3034_v46 }
 0x118   : > { %v2516_v9 = vpop.eup %2515  ;;  %v846_v11 = vmul.f32 %v2514_v6, %v3038_v49  ;;  %2533 = vpow2.f32 %v1862_v58 }
 0x119   : > { %v2518_v12 = vpop.eup %2517  ;;  %v844_v14 = vmul.f32 %v2516_v9, %v3042_v52  ;;  %2535 = vpow2.f32 %v1860_v0  ;;  %v2314_v15 = vpop.f32.mrb[20].mxu0 }
 0x11a   : > { %v2520_v16 = vpop.eup %2519  ;;  %v757_v18 = vadd.f32 1.0, %v2518_v12  ;;  %2537 = vpow2.f32 %v1863_v4  ;;  %v3113_v19 = vadd.f32 %v2314_v15, %v3012_v30  ;;  %v600_v20 = vpop.f32.mrb[21].mxu0  ;;  %v874_v22 = vpack.c.bf16 %v846_v11, %v845_v10 }
 0x11b   : > { %v2522_v44 = vpop.eup %2521  ;;  %v755_v23 = vadd.f32 1.0, %v2520_v16  ;;  %2539 = vpow2.f32 %v1861_v7  ;;  %v3116_v49 = vadd.f32 %v3012_v30, %v600_v20  ;;  %v2315_v46 = vpop.f32.mrb[22].mxu0  ;;  %v873_v52 = vpack.c.bf16 %v844_v14, %v843_v13 }
 0x11c   : > { %v2524_v24 = vpop.eup %2523  ;;  %2541 = vrcp.f32 %v757_v18  ;;  %v758_v26 = vadd.f32 1.0, %v2522_v44  ;;  %v1866_v27 = vmul.f32 -1.442695, %v3113_v19  ;;  %v3120_v28 = vadd.f32 %v2315_v46, %v3012_v30  ;;  %v603_v31 = vpop.f32.mrb[23].mxu0  ;;  %2218 = vst [vmem:[%s3094_s12 + $0x18] sm:$0xff] %v874_v22  }
 0x11d   : > { %2543 = vrcp.f32 %v755_v23  ;;  %v756_v33 = vadd.f32 1.0, %v2524_v24  ;;  %v1864_v35 = vmul.f32 -1.442695, %v3116_v49  ;;  %v3125_v36 = vadd.f32 %v3012_v30, %v603_v31  ;;  %2217 = vst [vmem:[%s3094_s12 + $0x10] sm:$0xff] %v873_v52   ;;  %2344 = vmatprep.mubr.bf16.mxu1 %v873_v52 }
 0x11e   : > { %v2526_v38 = vpop.eup %2525  ;;  %2545 = vrcp.f32 %v758_v26  ;;  %v1867_v39 = vmul.f32 -1.442695, %v3120_v28  ;;  %2345 = vmatmul.mubr.bf16.vlgmr.msra.gmra.mrb[0].mxu1 %v874_v22 }
 0x11f   : > { %v2528_v41 = vpop.eup %2527  ;;  %2547 = vrcp.f32 %v756_v33  ;;  %v1865_v42 = vmul.f32 -1.442695, %v3125_v36  ;;  %v849_v47 = vmul.f32 %v2526_v38, %v3047_v61 }
 0x120   : > { %v2530_v43 = vpop.eup %2529  ;;  %2549 = vpow2.f32 %v1866_v27  ;;  %v847_v54 = vmul.f32 %v2528_v41, %v3050_v1 }
 0x121   : > { %v2532_v45 = vpop.eup %2531  ;;  %v850_v48 = vmul.f32 %v2530_v43, %v3054_v5  ;;  %2551 = vpow2.f32 %v1864_v35  ;;  %v2318_v50 = vpop.f32.mrb[24].mxu0 }
 0x122   : > { %v2534_v51 = vpop.eup %2533  ;;  %v848_v32 = vmul.f32 %v2532_v45, %v3058_v8  ;;  %2553 = vpow2.f32 %v1867_v39  ;;  %v3135_v55 = vadd.f32 %v2318_v50, %v3012_v30  ;;  %v616_v56 = vpop.f32.mrb[25].mxu0 }
 0x123   : > { %v2536_v34 = vpop.eup %2535  ;;  %v761_v57 = vadd.f32 1.0, %v2534_v51  ;;  %2555 = vpow2.f32 %v1865_v42  ;;  %v3138_v61 = vadd.f32 %v3012_v30, %v616_v56  ;;  %v2319_v5 = vpop.f32.mrb[26].mxu0  ;;  %v876_v40 = vpack.c.bf16 %v850_v48, %v849_v47 }
 0x124   : > { %v2538_v58 = vpop.eup %2537  ;;  %v759_v60 = vadd.f32 1.0, %v2536_v34  ;;  %v3141_v1 = vadd.f32 %v2319_v5, %v3012_v30  ;;  %v619_v8 = vpop.f32.mrb[27].mxu0  ;;  %v875_v62 = vpack.c.bf16 %v848_v32, %v847_v54  ;;  %v1870_v3 = vmul.f32 -1.442695, %v3135_v55 }
 0x125   : > { %v2540_v63 = vpop.eup %2539  ;;  %2557 = vrcp.f32 %v761_v57  ;;  %v762_v0 = vadd.f32 1.0, %v2538_v58  ;;  %v3145_v4 = vadd.f32 %v3012_v30, %v619_v8  ;;  %2220 = vst [vmem:[%s3094_s12 + $0x28] sm:$0xff] %v876_v40   ;;  %v1868_v9 = vmul.f32 -1.442695, %v3138_v61 }
 0x126   : > { %v2542_v6 = vpop.eup %2541  ;;  %2559 = vrcp.f32 %v759_v60  ;;  %v760_v7 = vadd.f32 1.0, %v2540_v63  ;;  %2219 = vst [vmem:[%s3094_s12 + $0x20] sm:$0xff] %v875_v62   ;;  %2348 = vmatprep.mubr.bf16.mxu1 %v875_v62  ;;  %v1871_v11 = vmul.f32 -1.442695, %v3141_v1 }
 0x127   : > { %v2544_v10 = vpop.eup %2543  ;;  %2561 = vrcp.f32 %v762_v0  ;;  %2349 = vmatmul.mubr.bf16.gmra.mrb[4].mxu1 %v876_v40  ;;  %v1869_v13 = vmul.f32 -1.442695, %v3145_v4  ;;  %v853_v15 = vmul.f32 %v2542_v6, %v3063_v17 }
 0x128   : > { %v2546_v12 = vpop.eup %2545  ;;  %2563 = vrcp.f32 %v760_v7  ;;  %v851_v27 = vmul.f32 %v2544_v10, %v3069_v21 }
 0x129   : > { %v2548_v14 = vpop.eup %2547  ;;  %v854_v16 = vmul.f32 %v2546_v12, %v3073_v25  ;;  %2565 = vpow2.f32 %v1870_v3  ;;  %v2322_v18 = vpop.f32.mrb[28].mxu0 }
 0x12a   : > { %v2550_v20 = vpop.eup %2549  ;;  %v852_v22 = vmul.f32 %v2548_v14, %v3077_v29  ;;  %2567 = vpow2.f32 %v1868_v9  ;;  %v3156_v44 = vadd.f32 %v2322_v18, %v3012_v30  ;;  %v632_v23 = vpop.f32.mrb[29].mxu0 }
 0x12b   : > { %v2552_v46 = vpop.eup %2551  ;;  %v765_v52 = vadd.f32 1.0, %v2550_v20  ;;  %2569 = vpow2.f32 %v1871_v11  ;;  %v3159_v24 = vadd.f32 %v3012_v30, %v632_v23  ;;  %v2323_v17 = vpop.f32.mrb[30].mxu0  ;;  %v878_v26 = vpack.c.bf16 %v854_v16, %v853_v15 }
 0x12c   : > { %v2554_v25 = vpop.eup %2553  ;;  %v763_v31 = vadd.f32 1.0, %v2552_v46  ;;  %2571 = vpow2.f32 %v1869_v13  ;;  %v3163_v29 = vadd.f32 %v2323_v17, %v3012_v30  ;;  %v635_v33 = vpop.f32.mrb[31].mxu0  ;;  %v1874_v39 = vmul.f32 -1.442695, %v3156_v44 }
 0x12d   : > { %v2556_v35 = vpop.eup %2555  ;;  %2573 = vrcp.f32 %v765_v52  ;;  %v766_v38 = vadd.f32 1.0, %v2554_v25  ;;  %v3167_v41 = vadd.f32 %v3012_v30, %v635_v33  ;;  %2222 = vst [vmem:[%s3094_s12 + $0x38] sm:$0xff] %v878_v26   ;;  %v1872_v21 = vmul.f32 -1.442695, %v3159_v24 }
 0x12e   : > { %2575 = vrcp.f32 %v763_v31  ;;  %v764_v42 = vadd.f32 1.0, %v2556_v35  ;;  %v877_v43 = vpack.c.bf16 %v852_v22, %v851_v27  ;;  %v1875_v47 = vmul.f32 -1.442695, %v3163_v29 }
 0x12f   : > { %v2558_v45 = vpop.eup %2557  ;;  %2577 = vrcp.f32 %v766_v38  ;;  %v1873_v50 = vmul.f32 -1.442695, %v3167_v41 }
 0x130   : > { %v2560_v48 = vpop.eup %2559  ;;  %2579 = vrcp.f32 %v764_v42  ;;  %2221 = vst [vmem:[%s3094_s12 + $0x30] sm:$0xff] %v877_v43   ;;  %2352 = vmatprep.mubr.bf16.mxu1 %v877_v43  ;;  %v857_v54 = vmul.f32 %v2558_v45, %v3087_v53 }
 0x131   : > { %v2562_v51 = vpop.eup %2561  ;;  %2581 = vpow2.f32 %v1874_v39  ;;  %2353 = vmatmul.mubr.bf16.gmra.mrb[8].mxu1 %v878_v26  ;;  %v855_v34 = vmul.f32 %v2560_v48, %v3090_v37 }
 0x132   : > { %v2564_v30 = vpop.eup %2563  ;;  %v858_v32 = vmul.f32 %v2562_v51, %v3099_v59  ;;  %2583 = vpow2.f32 %v1872_v21 }
 0x133   : > { %v2566_v56 = vpop.eup %2565  ;;  %v856_v57 = vmul.f32 %v2564_v30, %v3103_v2  ;;  %2585 = vpow2.f32 %v1875_v47 }
 0x134   : > { %v2568_v5 = vpop.eup %2567  ;;  %v769_v40 = vadd.f32 1.0, %v2566_v56  ;;  %2587 = vpow2.f32 %v1873_v50  ;;  %v880_v58 = vpack.c.bf16 %v858_v32, %v857_v54 }
 0x135   : > { %v2570_v60 = vpop.eup %2569  ;;  %v767_v8 = vadd.f32 1.0, %v2568_v5  ;;  %v879_v62 = vpack.c.bf16 %v856_v57, %v855_v34 }
 0x136   : > { %v2572_v63 = vpop.eup %2571  ;;  %2589 = vrcp.f32 %v769_v40  ;;  %v770_v53 = vadd.f32 1.0, %v2570_v60  ;;  %2224 = vst [vmem:[%s3094_s12 + $0x48] sm:$0xff] %v880_v58  }
 0x137   : > { %v2574_v59 = vpop.eup %2573  ;;  %2591 = vrcp.f32 %v767_v8  ;;  %v768_v0 = vadd.f32 1.0, %v2572_v63  ;;  %2223 = vst [vmem:[%s3094_s12 + $0x40] sm:$0xff] %v879_v62   ;;  %2356 = vmatprep.mubr.bf16.mxu1 %v879_v62 }
 0x138   : > { %v2576_v37 = vpop.eup %2575  ;;  %2593 = vrcp.f32 %v770_v53  ;;  %v861_v6 = vmul.f32 %v2574_v59, %v3113_v19 }
 0x139   : > { %v2578_v2 = vpop.eup %2577  ;;  %2595 = vrcp.f32 %v768_v0  ;;  %2357 = vmatmul.mubr.bf16.gmra.mrb[12].mxu1 %v880_v58  ;;  %v859_v10 = vmul.f32 %v2576_v37, %v3116_v49 }
 0x13a   : > { %v2580_v3 = vpop.eup %2579  ;;  %v862_v7 = vmul.f32 %v2578_v2, %v3120_v28 }
 0x13b   : > { %v2582_v9 = vpop.eup %2581  ;;  %v860_v11 = vmul.f32 %v2580_v3, %v3125_v36 }
 0x13c   : > { %v2584_v12 = vpop.eup %2583  ;;  %v773_v13 = vadd.f32 1.0, %v2582_v9  ;;  %v882_v14 = vpack.c.bf16 %v862_v7, %v861_v6 }
 0x13d   : > { %v2586_v15 = vpop.eup %2585  ;;  %v771_v16 = vadd.f32 1.0, %v2584_v12  ;;  %v881_v18 = vpack.c.bf16 %v860_v11, %v859_v10 }
 0x13e   : > { %v2588_v20 = vpop.eup %2587  ;;  %2597 = vrcp.f32 %v773_v13  ;;  %v774_v22 = vadd.f32 1.0, %v2586_v15  ;;  %2226 = vst [vmem:[%s3094_s12 + $0x58] sm:$0xff] %v882_v14  }
 0x13f   : > { %2599 = vrcp.f32 %v771_v16  ;;  %v772_v19 = vadd.f32 1.0, %v2588_v20  ;;  %2225 = vst [vmem:[%s3094_s12 + $0x50] sm:$0xff] %v881_v18   ;;  %2360 = vmatprep.mubr.bf16.mxu1 %v881_v18 }
 0x140   : > { %v2590_v28 = vpop.eup %2589  ;;  %2601 = vrcp.f32 %v774_v22 }
 0x141   : > { %v2592_v49 = vpop.eup %2591  ;;  %2603 = vrcp.f32 %v772_v19  ;;  %2361 = vmatmul.mubr.bf16.gmra.mrb[16].mxu1 %v882_v14  ;;  %v865_v46 = vmul.f32 %v2590_v28, %v3135_v55 }
 0x142   : > { %v2594_v36 = vpop.eup %2593  ;;  %v863_v17 = vmul.f32 %v2592_v49, %v3138_v61 }
 0x143   : > { %v2596_v23 = vpop.eup %2595  ;;  %v866_v52 = vmul.f32 %v2594_v36, %v3141_v1 }
 0x144   : > { %v864_v26 = vmul.f32 %v2596_v23, %v3145_v4 }
 0x145   : > { %v884_v25 = vpack.c.bf16 %v866_v52, %v865_v46 }
 0x146   : > { %v883_v27 = vpack.c.bf16 %v864_v26, %v863_v17 }
 0x147   : > { %2228 = vst [vmem:[%s3094_s12 + $0x68] sm:$0xff] %v884_v25  }
 0x148   : > { %v2598_v31 = vpop.eup %2597  ;;  %2227 = vst [vmem:[%s3094_s12 + $0x60] sm:$0xff] %v883_v27   ;;  %2364 = vmatprep.mubr.bf16.mxu1 %v883_v27 }
 0x149   : > { %v2600_v33 = vpop.eup %2599  ;;  %2365 = vmatmul.mubr.bf16.gmra.mrb[20].mxu1 %v884_v25  ;;  %v869_v61 = vmul.f32 %v2598_v31, %v3156_v44 }
 0x14a   : > { %v2602_v55 = vpop.eup %2601  ;;  %v867_v35 = vmul.f32 %v2600_v33, %v3159_v24 }
 0x14b   : > { %v2604_v1 = vpop.eup %2603  ;;  %v870_v4 = vmul.f32 %v2602_v55, %v3163_v29 }
 0x14c   : > { %v868_v38 = vmul.f32 %v2604_v1, %v3167_v41 }
 0x14d   : > { %v886_v39 = vpack.c.bf16 %v870_v4, %v869_v61 }
 0x14e   : > { %v885_v42 = vpack.c.bf16 %v868_v38, %v867_v35 }
 0x14f   : > { %2230 = vst [vmem:[%s3094_s12 + $0x78] sm:$0xff] %v886_v39  }
 0x150   : > { %2229 = vst [vmem:[%s3094_s12 + $0x70] sm:$0xff] %v885_v42   ;;  %2368 = vmatprep.mubr.bf16.mxu1 %v885_v42 }
 0x151   : > { %2369 = vmatmul.mubr.bf16.gmra.mrb[24].mxu1 %v886_v39 }
 0x152   : > { %2746 = shalt.err (!%p2743_p5)
}
 0x153   : > { %s2747_s30 = scalar_lea.hbm %s3205_s17, 2048  ;;  %s2751_s16 = scalar_lea.hbm %s3485_s5, 4096 }
 0x154   : > { %p2748_p6 = scmp.ne.s32.totalorder %s3205_s17, %s2747_s30  ;;  %p2752_p10 = scmp.lt.u32.totalorder %s3205_s17, %s3485_s5 }
 0x155   : > { %p2753_p11 = scmp.lt.u32.totalorder %s2751_s16, %s2747_s30  ;;  %p2755_p13 = scmp.lt.u32.totalorder %s2747_s30, %s3205_s17 }
 0x156   : > { %p2749_p7 = pnand %p2748_p6, %p2925_p4 }
 0x157   : > { %p2754_p12 = por %p2753_p11, %p2752_p10 }
 0x158   : > { %p2750_p9 = pneg %p2749_p7 }
 0x159   : > { %p2756_p0 = por %p2755_p13, %p2754_p12 }
 0x15b   : > { %p2757_p1 = pnand %p2756_p0, %p2750_p9 }
 0x15d   : > { %2760 = shalt.err (!%p2757_p1)
}
 0x15e   : > { %s2847_s19 = smov 64   ;;  %s2848_s28 = smov 4   ;;  %v3239_v44 = vld [vmem:[%s3484_s4] ss:$0 sm:$0xff] }
 0x15f   : > { %2388 = dma.vmem_to_hbm [thread:$0]  (%p2925_p4), %s3207_s14, 2048, %s3205_s17, %s1648_s18, %s2847_s19, %s2847_s19, %s2848_s28  }
 0x160   : > { %s3310_s14 = scalar_lea.vmem [#allocation4], %s1805_s11  ;;  %s3425_s30 = scalar_lea.hbm %s3486_s6, %s2054_s13 }
 0x161   : > { %s1686_s11 = sshll.u32 %s3310_s14, 4  ;;  %s1653_s16 = scalar_lea.sflag [#allocation5], %s3066_s8  ;;  %s3427_s11 = int_to_ptr.vmem [resolvable:$true] %s1686_s11 }
 0x162   : > { %s2761_s20 = scalar_lea.vmem %s3427_s11, 2048  ;;  %s2849_s27 = smov [#allocation4]  }
 0x163   : > { %p2762_p2 = scmp.ne.s32.totalorder %s3427_s11, %s2761_s20  ;;  %s2765_s24 = sshll.u32 %s2849_s27, 4  ;;  %s2766_s24 = int_to_ptr.vmem [resolvable:$false] %s2765_s24 }
 0x164   : > { %s2767_s12 = scalar_lea.vmem %s2766_s24, 4096  ;;  %p2768_p6 = scmp.lt.s32.totalorder %s3427_s11, %s2766_s24 }
 0x165   : > { %p2763_p3 = pnand %p2762_p2, %p2925_p4  ;;  %p2769_p7 = scmp.lt.s32.totalorder %s2767_s12, %s2761_s20 }
 0x167   : > { %p2764_p5 = pneg %p2763_p3  ;;  %p2770_p9 = por %p2769_p7, %p2768_p6 }
 0x169   : > { %p2771_p10 = pnand %p2770_p9, %p2764_p5 }
 0x1e9   : > { %v2342_v24 = vpop.f32.mrb[32].mxu0 }
 0x1ea   : > { %v3242_v29 = vadd.f32 %v2342_v24, %v3239_v44  ;;  %v1136_v41 = vpop.f32.mrb[33].mxu0 }
 0x1eb   : > { %v3245_v21 = vadd.f32 %v3239_v44, %v1136_v41  ;;  %v2343_v43 = vpop.f32.mrb[34].mxu0 }
 0x1ec   : > { %v1919_v45 = vmul.f32 -1.442695, %v3242_v29  ;;  %v3249_v47 = vadd.f32 %v2343_v43, %v3239_v44  ;;  %v1139_v48 = vpop.f32.mrb[35].mxu0 }
 0x1ed   : > { %v1917_v50 = vmul.f32 -1.442695, %v3245_v21  ;;  %v3253_v51 = vadd.f32 %v3239_v44, %v1139_v48 }
 0x1ee   : > { %2605 = vpow2.f32 %v1919_v45  ;;  %v1920_v30 = vmul.f32 -1.442695, %v3249_v47 }
 0x1ef   : > { %2607 = vpow2.f32 %v1917_v50  ;;  %v1918_v54 = vmul.f32 -1.442695, %v3253_v51 }
 0x1f0   : > { %2609 = vpow2.f32 %v1920_v30 }
 0x1f1   : > { %2611 = vpow2.f32 %v1918_v54  ;;  %v2346_v32 = vpop.f32.mrb[0].mxu1 }
 0x1f2   : > { %v3258_v56 = vadd.f32 %v2346_v32, %v3239_v44  ;;  %v1152_v34 = vpop.f32.mrb[1].mxu1 }
 0x1f3   : > { %v3261_v57 = vadd.f32 %v3239_v44, %v1152_v34  ;;  %v2347_v5 = vpop.f32.mrb[2].mxu1 }
 0x1f4   : > { %v1923_v40 = vmul.f32 -1.442695, %v3258_v56  ;;  %v3265_v58 = vadd.f32 %v2347_v5, %v3239_v44  ;;  %v1155_v60 = vpop.f32.mrb[3].mxu1 }
 0x1f5   : > { %v1921_v8 = vmul.f32 -1.442695, %v3261_v57  ;;  %v3269_v62 = vadd.f32 %v3239_v44, %v1155_v60 }
 0x1f6   : > { %2613 = vpow2.f32 %v1923_v40  ;;  %v1924_v63 = vmul.f32 -1.442695, %v3265_v58 }
 0x1f7   : > { %2615 = vpow2.f32 %v1921_v8  ;;  %v1922_v53 = vmul.f32 -1.442695, %v3269_v62 }
 0x1f8   : > { %v2606_v59 = vpop.eup %2605  ;;  %2617 = vpow2.f32 %v1924_v63 }
 0x1f9   : > { %v2608_v0 = vpop.eup %2607  ;;  %v1361_v37 = vadd.f32 1.0, %v2606_v59  ;;  %2619 = vpow2.f32 %v1922_v53 }
 0x1fa   : > { %v2610_v2 = vpop.eup %2609  ;;  %v1359_v3 = vadd.f32 1.0, %v2608_v0  ;;  %v2350_v6 = vpop.f32.mrb[4].mxu1 }
 0x1fb   : > { %v2612_v7 = vpop.eup %2611  ;;  %2621 = vrcp.f32 %v1361_v37  ;;  %v1362_v9 = vadd.f32 1.0, %v2610_v2  ;;  %v3274_v10 = vadd.f32 %v2350_v6, %v3239_v44  ;;  %v1168_v11 = vpop.f32.mrb[5].mxu1 }
 0x1fc   : > { %2623 = vrcp.f32 %v1359_v3  ;;  %v1360_v12 = vadd.f32 1.0, %v2612_v7  ;;  %v3277_v13 = vadd.f32 %v3239_v44, %v1168_v11  ;;  %v2351_v14 = vpop.f32.mrb[6].mxu1 }
 0x1fd   : > { %2625 = vrcp.f32 %v1362_v9  ;;  %v1927_v15 = vmul.f32 -1.442695, %v3274_v10  ;;  %v3281_v16 = vadd.f32 %v2351_v14, %v3239_v44  ;;  %v1171_v18 = vpop.f32.mrb[7].mxu1 }
 0x1fe   : > { %2627 = vrcp.f32 %v1360_v12  ;;  %v1925_v20 = vmul.f32 -1.442695, %v3277_v13  ;;  %v3285_v22 = vadd.f32 %v3239_v44, %v1171_v18 }
 0x1ff   : > { %2629 = vpow2.f32 %v1927_v15  ;;  %v1928_v19 = vmul.f32 -1.442695, %v3281_v16 }
 0x200   : > { %v2614_v28 = vpop.eup %2613  ;;  %2631 = vpow2.f32 %v1925_v20  ;;  %v1926_v49 = vmul.f32 -1.442695, %v3285_v22 }
 0x201   : > { %v2616_v36 = vpop.eup %2615  ;;  %v1365_v23 = vadd.f32 1.0, %v2614_v28  ;;  %2633 = vpow2.f32 %v1928_v19 }
 0x202   : > { %v2618_v46 = vpop.eup %2617  ;;  %v1363_v52 = vadd.f32 1.0, %v2616_v36  ;;  %2635 = vpow2.f32 %v1926_v49 }
 0x203   : > { %v2620_v17 = vpop.eup %2619  ;;  %2637 = vrcp.f32 %v1365_v23  ;;  %v1366_v26 = vadd.f32 1.0, %v2618_v46 }
 0x204   : > { %2639 = vrcp.f32 %v1363_v52  ;;  %v1364_v25 = vadd.f32 1.0, %v2620_v17  ;;  %v2354_v27 = vpop.f32.mrb[8].mxu1 }
 0x205   : > { %v2622_v31 = vpop.eup %2621  ;;  %2641 = vrcp.f32 %v1366_v26  ;;  %v3290_v33 = vadd.f32 %v2354_v27, %v3239_v44  ;;  %v1184_v55 = vpop.f32.mrb[9].mxu1 }
 0x206   : > { %v2624_v1 = vpop.eup %2623  ;;  %2643 = vrcp.f32 %v1364_v25  ;;  %v3293_v61 = vadd.f32 %v3239_v44, %v1184_v55  ;;  %v2355_v4 = vpop.f32.mrb[10].mxu1  ;;  %v1457_v41 = vmul.f32 %v2622_v31, %v3242_v29 }
 0x207   : > { %v2626_v35 = vpop.eup %2625  ;;  %v1931_v38 = vmul.f32 -1.442695, %v3290_v33  ;;  %v3297_v39 = vadd.f32 %v2355_v4, %v3239_v44  ;;  %v1187_v42 = vpop.f32.mrb[11].mxu1  ;;  %v1455_v30 = vmul.f32 %v2624_v1, %v3245_v21 }
 0x208   : > { %v2628_v24 = vpop.eup %2627  ;;  %v1458_v43 = vmul.f32 %v2626_v35, %v3249_v47  ;;  %v1929_v45 = vmul.f32 -1.442695, %v3293_v61  ;;  %v3303_v48 = vadd.f32 %v3239_v44, %v1187_v42 }
 0x209   : > { %v2630_v50 = vpop.eup %2629  ;;  %v1456_v54 = vmul.f32 %v2628_v24, %v3253_v51  ;;  %2645 = vpow2.f32 %v1931_v38  ;;  %v1932_v32 = vmul.f32 -1.442695, %v3297_v39 }
 0x20a   : > { %v2632_v34 = vpop.eup %2631  ;;  %v2144_v5 = vpack.c.bf16 %v1458_v43, %v1457_v41  ;;  %v1369_v40 = vadd.f32 1.0, %v2630_v50  ;;  %2647 = vpow2.f32 %v1929_v45  ;;  %v1930_v51 = vmul.f32 -1.442695, %v3303_v48 }
 0x20b   : > { %v2634_v29 = vpop.eup %2633  ;;  %v2139_v47 = vpack.c.bf16 %v1456_v54, %v1455_v30  ;;  %v1367_v60 = vadd.f32 1.0, %v2632_v34  ;;  %2649 = vpow2.f32 %v1932_v32 }
 0x20c   : > { %v2636_v8 = vpop.eup %2635  ;;  %2231 = vst [vmem:[%s3310_s14 + $0x8] sm:$0xff] %v2144_v5   ;;  %2651 = vrcp.f32 %v1369_v40  ;;  %v1370_v21 = vadd.f32 1.0, %v2634_v29  ;;  %v2358_v63 = vpop.f32.mrb[12].mxu1 }
 0x20d   : > { %v2638_v53 = vpop.eup %2637  ;;  %2140 = vst [vmem:[%s3310_s14] sm:$0xff] %v2139_v47   ;;  %2653 = vrcp.f32 %v1367_v60  ;;  %v1368_v59 = vadd.f32 1.0, %v2636_v8  ;;  %v3316_v0 = vadd.f32 %v2358_v63, %v3239_v44  ;;  %v1200_v37 = vpop.f32.mrb[13].mxu1 }
 0x20e   : > { %v2640_v2 = vpop.eup %2639  ;;  %2655 = vrcp.f32 %v1370_v21  ;;  %v3319_v3 = vadd.f32 %v3239_v44, %v1200_v37  ;;  %v2359_v6 = vpop.f32.mrb[14].mxu1  ;;  %v1461_v9 = vmul.f32 %v2638_v53, %v3258_v56 }
 0x20f   : > { %v2642_v7 = vpop.eup %2641  ;;  %2657 = vrcp.f32 %v1368_v59  ;;  %v1935_v11 = vmul.f32 -1.442695, %v3316_v0  ;;  %v3324_v12 = vadd.f32 %v2359_v6, %v3239_v44  ;;  %v1203_v14 = vpop.f32.mrb[15].mxu1  ;;  %v1459_v28 = vmul.f32 %v2640_v2, %v3261_v57 }
 0x210   : > { %v2644_v15 = vpop.eup %2643  ;;  %v1462_v18 = vmul.f32 %v2642_v7, %v3265_v58  ;;  %2659 = vpow2.f32 %v1930_v51  ;;  %v1933_v20 = vmul.f32 -1.442695, %v3319_v3  ;;  %v3329_v19 = vadd.f32 %v3239_v44, %v1203_v14 }
 0x211   : > { %v1460_v56 = vmul.f32 %v2644_v15, %v3269_v62  ;;  %2661 = vpow2.f32 %v1935_v11  ;;  %v1936_v49 = vmul.f32 -1.442695, %v3324_v12 }
 0x212   : > { %v2154_v36 = vpack.c.bf16 %v1462_v18, %v1461_v9  ;;  %2663 = vpow2.f32 %v1933_v20  ;;  %v1934_v23 = vmul.f32 -1.442695, %v3329_v19 }
 0x213   : > { %v2646_v46 = vpop.eup %2645  ;;  %v2149_v58 = vpack.c.bf16 %v1460_v56, %v1459_v28  ;;  %2665 = vpow2.f32 %v1936_v49 }
 0x214   : > { %v2648_v52 = vpop.eup %2647  ;;  %2233 = vst [vmem:[%s3310_s14 + $0x18] sm:$0xff] %v2154_v36   ;;  %v1373_v17 = vadd.f32 1.0, %v2646_v46  ;;  %2667 = vpow2.f32 %v1934_v23  ;;  %v2362_v26 = vpop.f32.mrb[16].mxu1 }
 0x215   : > { %v2650_v25 = vpop.eup %2649  ;;  %2232 = vst [vmem:[%s3310_s14 + $0x10] sm:$0xff] %v2149_v58   ;;  %v1371_v57 = vadd.f32 1.0, %v2648_v52  ;;  %v3338_v62 = vadd.f32 %v2362_v26, %v3239_v44  ;;  %v1216_v27 = vpop.f32.mrb[17].mxu1 }
 0x216   : > { %v2652_v31 = vpop.eup %2651  ;;  %2669 = vrcp.f32 %v1373_v17  ;;  %v1374_v55 = vadd.f32 1.0, %v2650_v25  ;;  %v3341_v1 = vadd.f32 %v3239_v44, %v1216_v27  ;;  %v2363_v4 = vpop.f32.mrb[18].mxu1 }
 0x217   : > { %v2654_v35 = vpop.eup %2653  ;;  %2671 = vrcp.f32 %v1371_v57  ;;  %v1939_v38 = vmul.f32 -1.442695, %v3338_v62  ;;  %v3345_v42 = vadd.f32 %v2363_v4, %v3239_v44  ;;  %v1219_v24 = vpop.f32.mrb[19].mxu1  ;;  %v1465_v30 = vmul.f32 %v2652_v31, %v3274_v10 }
 0x218   : > { %v2656_v41 = vpop.eup %2655  ;;  %2673 = vrcp.f32 %v1374_v55  ;;  %v1937_v43 = vmul.f32 -1.442695, %v3341_v1  ;;  %v3349_v45 = vadd.f32 %v3239_v44, %v1219_v24  ;;  %v1463_v5 = vmul.f32 %v2654_v35, %v3277_v13 }
 0x219   : > { %v2658_v50 = vpop.eup %2657  ;;  %v1466_v54 = vmul.f32 %v2656_v41, %v3281_v16  ;;  %2675 = vpow2.f32 %v1939_v38  ;;  %v1940_v32 = vmul.f32 -1.442695, %v3345_v42 }
 0x21a   : > { %v2660_v34 = vpop.eup %2659  ;;  %v1464_v40 = vmul.f32 %v2658_v50, %v3285_v22  ;;  %2677 = vpow2.f32 %v1937_v43  ;;  %v1938_v29 = vmul.f32 -1.442695, %v3349_v45 }
 0x21b   : > { %v2662_v47 = vpop.eup %2661  ;;  %v2164_v60 = vpack.c.bf16 %v1466_v54, %v1465_v30  ;;  %v1372_v8 = vadd.f32 1.0, %v2660_v34  ;;  %2679 = vpow2.f32 %v1940_v32 }
 0x21c   : > { %v2664_v10 = vpop.eup %2663  ;;  %v2159_v21 = vpack.c.bf16 %v1464_v40, %v1463_v5  ;;  %v1377_v16 = vadd.f32 1.0, %v2662_v47  ;;  %2681 = vpow2.f32 %v1938_v29  ;;  %v2366_v51 = vpop.f32.mrb[20].mxu1 }
 0x21d   : > { %v2666_v63 = vpop.eup %2665  ;;  %2235 = vst [vmem:[%s3310_s14 + $0x28] sm:$0xff] %v2164_v60   ;;  %2683 = vrcp.f32 %v1372_v8  ;;  %v1375_v53 = vadd.f32 1.0, %v2664_v10  ;;  %v3359_v13 = vadd.f32 %v2366_v51, %v3239_v44  ;;  %v1232_v22 = vpop.f32.mrb[21].mxu1 }
 0x21e   : > { %v2668_v59 = vpop.eup %2667  ;;  %2234 = vst [vmem:[%s3310_s14 + $0x20] sm:$0xff] %v2159_v21   ;;  %2685 = vrcp.f32 %v1377_v16  ;;  %v1378_v37 = vadd.f32 1.0, %v2666_v63  ;;  %v3363_v2 = vadd.f32 %v3239_v44, %v1232_v22  ;;  %v2367_v6 = vpop.f32.mrb[22].mxu1 }
 0x21f   : > { %2687 = vrcp.f32 %v1375_v53  ;;  %v1376_v7 = vadd.f32 1.0, %v2668_v59  ;;  %v1943_v9 = vmul.f32 -1.442695, %v3359_v13  ;;  %v3367_v11 = vadd.f32 %v2367_v6, %v3239_v44  ;;  %v1235_v14 = vpop.f32.mrb[23].mxu1 }
 0x220   : > { %v2670_v15 = vpop.eup %2669  ;;  %2689 = vrcp.f32 %v1378_v37  ;;  %v1941_v18 = vmul.f32 -1.442695, %v3363_v2  ;;  %v3371_v20 = vadd.f32 %v3239_v44, %v1235_v14 }
 0x221   : > { %v2672_v28 = vpop.eup %2671  ;;  %2691 = vrcp.f32 %v1376_v7  ;;  %v1944_v56 = vmul.f32 -1.442695, %v3367_v11  ;;  %v1469_v46 = vmul.f32 %v2670_v15, %v3290_v33 }
 0x222   : > { %v2674_v49 = vpop.eup %2673  ;;  %2693 = vpow2.f32 %v1943_v9  ;;  %v1942_v36 = vmul.f32 -1.442695, %v3371_v20  ;;  %v1467_v35 = vmul.f32 %v2672_v28, %v3293_v61 }
 0x223   : > { %v2676_v23 = vpop.eup %2675  ;;  %v1470_v58 = vmul.f32 %v2674_v49, %v3297_v39  ;;  %2695 = vpow2.f32 %v1941_v18 }
 0x224   : > { %v2678_v52 = vpop.eup %2677  ;;  %v1381_v17 = vadd.f32 1.0, %v2676_v23  ;;  %2697 = vpow2.f32 %v1944_v56  ;;  %v2370_v26 = vpop.f32.mrb[24].mxu1 }
 0x225   : > { %v2680_v25 = vpop.eup %2679  ;;  %v2174_v57 = vpack.c.bf16 %v1470_v58, %v1469_v46  ;;  %v1379_v27 = vadd.f32 1.0, %v2678_v52  ;;  %2699 = vpow2.f32 %v1942_v36  ;;  %v3378_v31 = vadd.f32 %v2370_v26, %v3239_v44  ;;  %v1248_v55 = vpop.f32.mrb[25].mxu1 }
 0x226   : > { %v2682_v4 = vpop.eup %2681  ;;  %2701 = vrcp.f32 %v1381_v17  ;;  %v1382_v33 = vadd.f32 1.0, %v2680_v25  ;;  %v3382_v39 = vadd.f32 %v3239_v44, %v1248_v55  ;;  %v2371_v38 = vpop.f32.mrb[26].mxu1 }
 0x227   : > { %v2684_v24 = vpop.eup %2683  ;;  %2237 = vst [vmem:[%s3310_s14 + $0x38] sm:$0xff] %v2174_v57   ;;  %2703 = vrcp.f32 %v1379_v27  ;;  %v1380_v41 = vadd.f32 1.0, %v2682_v4  ;;  %v1947_v43 = vmul.f32 -1.442695, %v3378_v31  ;;  %v3387_v50 = vadd.f32 %v2371_v38, %v3239_v44  ;;  %v1251_v30 = vpop.f32.mrb[27].mxu1 }
 0x228   : > { %v2686_v54 = vpop.eup %2685  ;;  %v1468_v32 = vmul.f32 %v2684_v24, %v3303_v48  ;;  %2705 = vrcp.f32 %v1382_v33  ;;  %v1945_v61 = vmul.f32 -1.442695, %v3382_v39  ;;  %v3392_v34 = vadd.f32 %v3239_v44, %v1251_v30 }
 0x229   : > { %v2688_v5 = vpop.eup %2687  ;;  %2707 = vrcp.f32 %v1380_v41  ;;  %v1948_v40 = vmul.f32 -1.442695, %v3387_v50  ;;  %v1473_v10 = vmul.f32 %v2686_v54, %v3316_v0 }
 0x22a   : > { %v2690_v29 = vpop.eup %2689  ;;  %v2169_v47 = vpack.c.bf16 %v1468_v32, %v1467_v35  ;;  %2709 = vpow2.f32 %v1947_v43  ;;  %v1946_v60 = vmul.f32 -1.442695, %v3392_v34  ;;  %v1471_v44 = vmul.f32 %v2688_v5, %v3319_v3 }
 0x22b   : > { %v2692_v8 = vpop.eup %2691  ;;  %v1474_v48 = vmul.f32 %v2690_v29, %v3324_v12  ;;  %2711 = vpow2.f32 %v1945_v61 }
 0x22c   : > { %v2694_v21 = vpop.eup %2693  ;;  %2236 = vst [vmem:[%s3310_s14 + $0x30] sm:$0xff] %v2169_v47   ;;  %v1472_v16 = vmul.f32 %v2692_v8, %v3329_v19  ;;  %2713 = vpow2.f32 %v1948_v40 }
 0x22d   : > { %v2696_v51 = vpop.eup %2695  ;;  %v2184_v63 = vpack.c.bf16 %v1474_v48, %v1473_v10  ;;  %v1385_v53 = vadd.f32 1.0, %v2694_v21  ;;  %2715 = vpow2.f32 %v1946_v60 }
 0x22e   : > { %v2698_v22 = vpop.eup %2697  ;;  %v2179_v59 = vpack.c.bf16 %v1472_v16, %v1471_v44  ;;  %v1383_v37 = vadd.f32 1.0, %v2696_v51 }
 0x22f   : > { %v2700_v0 = vpop.eup %2699  ;;  %2239 = vst [vmem:[%s3310_s14 + $0x48] sm:$0xff] %v2184_v63   ;;  %2717 = vrcp.f32 %v1385_v53  ;;  %v1386_v12 = vadd.f32 1.0, %v2698_v22 }
 0x230   : > { %v2702_v6 = vpop.eup %2701  ;;  %2238 = vst [vmem:[%s3310_s14 + $0x40] sm:$0xff] %v2179_v59   ;;  %2719 = vrcp.f32 %v1383_v37  ;;  %v1384_v7 = vadd.f32 1.0, %v2700_v0 }
 0x231   : > { %v2704_v9 = vpop.eup %2703  ;;  %2721 = vrcp.f32 %v1386_v12  ;;  %v1477_v14 = vmul.f32 %v2702_v6, %v3338_v62 }
 0x232   : > { %v2706_v3 = vpop.eup %2705  ;;  %2723 = vrcp.f32 %v1384_v7  ;;  %v1475_v28 = vmul.f32 %v2704_v9, %v3341_v1 }
 0x233   : > { %v2708_v19 = vpop.eup %2707  ;;  %v1478_v15 = vmul.f32 %v2706_v3, %v3345_v42 }
 0x234   : > { %v2710_v18 = vpop.eup %2709  ;;  %v1476_v56 = vmul.f32 %v2708_v19, %v3349_v45 }
 0x235   : > { %v2712_v49 = vpop.eup %2711  ;;  %v2194_v36 = vpack.c.bf16 %v1478_v15, %v1477_v14  ;;  %v1389_v23 = vadd.f32 1.0, %v2710_v18 }
 0x236   : > { %v2714_v46 = vpop.eup %2713  ;;  %v2189_v58 = vpack.c.bf16 %v1476_v56, %v1475_v28  ;;  %v1387_v52 = vadd.f32 1.0, %v2712_v49 }
 0x237   : > { %v2716_v17 = vpop.eup %2715  ;;  %2241 = vst [vmem:[%s3310_s14 + $0x58] sm:$0xff] %v2194_v36   ;;  %2725 = vrcp.f32 %v1389_v23  ;;  %v1390_v26 = vadd.f32 1.0, %v2714_v46 }
 0x238   : > { %2240 = vst [vmem:[%s3310_s14 + $0x50] sm:$0xff] %v2189_v58   ;;  %2727 = vrcp.f32 %v1387_v52  ;;  %v1388_v62 = vadd.f32 1.0, %v2716_v17 }
 0x239   : > { %v2718_v42 = vpop.eup %2717  ;;  %2729 = vrcp.f32 %v1390_v26 }
 0x23a   : > { %v2720_v1 = vpop.eup %2719  ;;  %2731 = vrcp.f32 %v1388_v62  ;;  %v1481_v57 = vmul.f32 %v2718_v42, %v3359_v13 }
 0x23b   : > { %v2722_v45 = vpop.eup %2721  ;;  %v1479_v55 = vmul.f32 %v2720_v1, %v3363_v2 }
 0x23c   : > { %v2724_v25 = vpop.eup %2723  ;;  %v1482_v27 = vmul.f32 %v2722_v45, %v3367_v11 }
 0x23d   : > { %v1480_v4 = vmul.f32 %v2724_v25, %v3371_v20 }
 0x23e   : > { %v2204_v35 = vpack.c.bf16 %v1482_v27, %v1481_v57 }
 0x23f   : > { %v2199_v33 = vpack.c.bf16 %v1480_v4, %v1479_v55 }
 0x240   : > { %2243 = vst [vmem:[%s3310_s14 + $0x68] sm:$0xff] %v2204_v35  }
 0x241   : > { %v2726_v38 = vpop.eup %2725  ;;  %2242 = vst [vmem:[%s3310_s14 + $0x60] sm:$0xff] %v2199_v33  }
 0x242   : > { %v2728_v24 = vpop.eup %2727  ;;  %v1485_v13 = vmul.f32 %v2726_v38, %v3378_v31 }
 0x243   : > { %v2730_v41 = vpop.eup %2729  ;;  %v1483_v2 = vmul.f32 %v2728_v24, %v3382_v39 }
 0x244   : > { %v2732_v43 = vpop.eup %2731  ;;  %v1486_v11 = vmul.f32 %v2730_v41, %v3387_v50 }
 0x245   : > { %v1484_v20 = vmul.f32 %v2732_v43, %v3392_v34 }
 0x246   : > { %v2214_v30 = vpack.c.bf16 %v1486_v11, %v1485_v13 }
 0x247   : > { %v2209_v54 = vpack.c.bf16 %v1484_v20, %v1483_v2 }
 0x248   : > { %2245 = vst [vmem:[%s3310_s14 + $0x78] sm:$0xff] %v2214_v30  }
 0x249   : > { %2244 = vst [vmem:[%s3310_s14 + $0x70] sm:$0xff] %v2209_v54  }
 0x24a   : > { %2774 = shalt.err (!%p2771_p10)
}
 0x24b   : > { %s2775_s13 = scalar_lea.hbm %s3425_s30, 2048  ;;  %s2779_s17 = scalar_lea.hbm %s3486_s6, 4096 }
 0x24c   : > { %p2776_p11 = scmp.ne.s32.totalorder %s3425_s30, %s2775_s13  ;;  %p2780_p0 = scmp.lt.u32.totalorder %s3425_s30, %s3486_s6 }
 0x24d   : > { %p2781_p1 = scmp.lt.u32.totalorder %s2779_s17, %s2775_s13  ;;  %p2783_p3 = scmp.lt.u32.totalorder %s2775_s13, %s3425_s30 }
 0x24e   : > { %p2777_p12 = pnand %p2776_p11, %p2925_p4 }
 0x24f   : > { %p2782_p2 = por %p2781_p1, %p2780_p0 }
 0x250   : > { %p2778_p13 = pneg %p2777_p12 }
 0x251   : > { %p2784_p5 = por %p2783_p3, %p2782_p2 }
 0x253   : > { %p2785_p6 = pnand %p2784_p5, %p2778_p13 }
 0x255   : > { %2788 = shalt.err (!%p2785_p6)
}
 0x256   : > { %2389 = dma.vmem_to_hbm [thread:$0]  (%p2925_p4), %s3427_s11, 2048, %s3425_s30, %s1653_s16, %s2847_s19, %s2847_s19, %s2848_s28  }
 0x257 PF: > { %p2399_p7 = scmp.ge.s32.totalorder %s2843_s26, 2  ;;  %s1701_s20 = sand.u32 1, %s2823_s21  }
 0x258   : > { %s1702_s24 = scalar_lea.sflag [#allocation3], %s1701_s20 }
 0x259   : > { %p2393_p9 = pnand %p2399_p7, %p2932_p8 }
 0x25b   : > { %2814 = dma.done.wait (!%p2393_p9), %s1702_s24, 2048  }
 0x25c   : > { %2816 = vsyncadd (!%p2393_p9), %s1702_s24, 4294965248  ;;  %s1711_s7 = scalar_lea.sflag [#allocation5], %s1701_s20 }
 0x25d   : > { %2818 = dma.done.wait (!%p2393_p9), %s1711_s7, 2048  }
 0x25e   : > { %2820 = vsyncadd (!%p2393_p9), %s1711_s7, 4294965248  ;;  %s23_s26 = sadd.s32 1, %s2843_s26   ;;  %s3489_s21 = smov %s2827_s22 }
 0x25f   : > { %p20_p10 = scmp.ge.s32.totalorder %s23_s26, 4   ;;  %s3490_s22 = smov %s2831_s23 }
 0x260   : > { %s3491_s23 = smov %s2938_s10  ;;  %s3492_s24 = smov %s2839_s25 }
 0x261   : > { %s3493_s25 = smov %s3495_s29  ;;  %22 = sbr.rel (!%p20_p10) target bundleno = 6 (0x6), region = 92 }
 0x268   :  { %1716 = vsyncpa [#allocation3], 1 }
 0x269   :  { %1718 = vsyncpa [#allocation3 + $0x1], 1 }
 0x26a   :  { %1719 = vsyncpa [#allocation5], 1 }
 0x26b   :  { %1721 = vsyncpa [#allocation5 + $0x1], 1 }

</bundles_post_ra>
